<compile_context>
chip_gen: v6e
topology: v6e:2x2x1
jax: 0.10.0
libtpu: 0.0.40
codegen_flags: <defaults>
</compile_context>

<pallas_src>
import jax
import jax.numpy as jnp
from jax.experimental import pallas as pl
from jax.experimental.pallas import tpu as pltpu

IN_TEAM = 210            # per-team input features (PyTorch: x[:, :210] / x[:, 210:])
IN_ALL = 2 * IN_TEAM     # 420 = full input width
H1 = 128                 # TeamFFN hidden 1
H2 = 64                  # TeamFFN hidden 2
HF = 64                  # final_layers hidden
TB_DEFAULT = 1024        # batch tile (rows per grid step); sweep 1024-2048 on v7x


def _is_v5e_device():
    """Pick the split layer-1 form only on v5e (128-wide MXU)."""
    try:
        kind = jax.devices()[0].device_kind.lower()
    except Exception:
        return False
    return ("v5e" in kind) or ("v5 lite" in kind) or ("v5lite" in kind)


def _tail(h, w2_ref, b2_ref, wf1_ref, bf1_ref, wf2_ref, bf2_ref, out_ref):
    """Shared layers 2..4: block-diagonal layer-2, final Linear+ReLU, 64->1 head."""
    # Both TeamFFN layer-2's at once; result is [h_primary | h_opposing] (TB, 128).
    h = jnp.dot(h, w2_ref[...], preferred_element_type=jnp.float32) + b2_ref[...]
    h = jnp.maximum(h, 0.0).astype(jnp.bfloat16)
    # final_layers Linear(128 -> 64) (+ folded BN) + ReLU.
    h = jnp.dot(h, wf1_ref[...], preferred_element_type=jnp.float32) + bf1_ref[...]
    h = jnp.maximum(h, 0.0)                                            # (TB, 64) f32
    # final Linear(64 -> 1): VPU multiply + lane reduction (an N=1 MXU pass is waste).
    out_ref[...] = jnp.sum(h * wf2_ref[...], axis=-1, keepdims=True) + bf2_ref[...]


def _make_kernel(split_l1):
    if split_l1:
        # v5e: two narrow (TB,210)x(210,128) dots -> 4 MXU weight-tile passes.
        def kernel(x_ref, w1p_ref, w1o_ref, b1_ref, w2_ref, b2_ref,
                   wf1_ref, bf1_ref, wf2_ref, bf2_ref, out_ref):
            x = x_ref[...]
            if x.dtype != jnp.bfloat16:          # no-op when the producer feeds bf16
                x = x.astype(jnp.bfloat16)
            hp = jnp.dot(x[:, :IN_TEAM], w1p_ref[...], preferred_element_type=jnp.float32)
            ho = jnp.dot(x[:, IN_TEAM:], w1o_ref[...], preferred_element_type=jnp.float32)
            h = jnp.concatenate([hp, ho], axis=-1) + b1_ref[...]       # (TB, 256)
            h = jnp.maximum(h, 0.0).astype(jnp.bfloat16)
            _tail(h, w2_ref, b2_ref, wf1_ref, bf1_ref, wf2_ref, bf2_ref, out_ref)
    else:
        # v6e / v7x: one wide block-diagonal (TB,420)x(420,256) dot (2 passes on 256 MXU).
        def kernel(x_ref, w1_ref, b1_ref, w2_ref, b2_ref,
                   wf1_ref, bf1_ref, wf2_ref, bf2_ref, out_ref):
            x = x_ref[...]
            if x.dtype != jnp.bfloat16:          # no-op when the producer feeds bf16
                x = x.astype(jnp.bfloat16)
            h = jnp.dot(x, w1_ref[...], preferred_element_type=jnp.float32) + b1_ref[...]
            h = jnp.maximum(h, 0.0).astype(jnp.bfloat16)               # (TB, 256)
            _tail(h, w2_ref, b2_ref, wf1_ref, bf1_ref, wf2_ref, bf2_ref, out_ref)
    return kernel


def dual_team_ffn(x, folded, *, block_b=TB_DEFAULT, split_l1=None):
    """x: [B, 420] float32 or bfloat16 -> [B, 1] float32 (eval-mode forward)."""
    B, F = x.shape
    assert F == IN_ALL, F
    if split_l1 is None:
        split_l1 = _is_v5e_device()

    # Whole array as one block for small B, else TB-row tiles with a masked tail
    # block (grid = cdiv(B, tb); no host-side padding copy).
    tb = B if B <= block_b else block_b
    grid = (pl.cdiv(B, tb),)

    if split_l1:
        keys = ("w1p", "w1o", "b1", "w2", "b2", "wf1", "bf1", "wf2", "bf2")
    else:
        keys = ("w1", "b1", "w2", "b2", "wf1", "bf1", "wf2", "bf2")
    weights = [folded[k] for k in keys]

    # Advisory cost hint so XLA overlaps neighbouring ops with this short HBM-bound call.
    weight_bytes = sum(int(w.size) * w.dtype.itemsize for w in weights)
    flops = 2 * B * (IN_ALL * 2 * H1 + (2 * H1) * (2 * H2) + (2 * H2) * HF + HF)
    bytes_accessed = B * IN_ALL * x.dtype.itemsize + weight_bytes + B * 4

    out = pl.pallas_call(
        _make_kernel(split_l1),
        out_shape=jax.ShapeDtypeStruct((B, 1), jnp.float32),
        grid=grid,
        in_specs=[pl.BlockSpec((tb, IN_ALL), lambda i: (i, 0))]
        + [pl.BlockSpec(w.shape, lambda i: (0, 0)) for w in weights],
        out_specs=pl.BlockSpec((tb, 1), lambda i: (i, 0)),
        compiler_params=pltpu.CompilerParams(
            dimension_semantics=("parallel",),
            # Only needed when sweeping TB past 1024 (v7x); default tile fits the
            # 16 MiB scoped-VMEM default on v5e.
            vmem_limit_bytes=(64 * 1024 * 1024 if tb > 1024 else None),
        ),
        cost_estimate=pl.CostEstimate(
            flops=flops, transcendentals=0, bytes_accessed=bytes_accessed),
    )(x, *weights)
    return out


def fold_params(p):
    """Fold eval-mode BN into the linears; provide both fused and split layer-1 forms."""
    def fold(w, b, s, t):                      # y = (xW + b)*s + t = x(W*s) + (b*s + t)
        return w * s[None, :], b * s + t

    w1p, b1p = fold(p["p_w1"], p["p_b1"], p["p_s1"], p["p_t1"])
    w2p, b2p = fold(p["p_w2"], p["p_b2"], p["p_s2"], p["p_t2"])
    w1o, b1o = fold(p["o_w1"], p["o_b1"], p["o_s1"], p["o_t1"])
    w2o, b2o = fold(p["o_w2"], p["o_b2"], p["o_s2"], p["o_t2"])
    wf1, bf1 = fold(p["f_w1"], p["f_b1"], p["f_s1"], p["f_t1"])

    w1_blk = jnp.zeros((IN_ALL, 2 * H1), jnp.float32)
    w1_blk = w1_blk.at[:IN_TEAM, :H1].set(w1p).at[IN_TEAM:, H1:].set(w1o)
    b1_blk = jnp.concatenate([b1p, b1o]).reshape(1, 2 * H1)

    w2_blk = jnp.zeros((2 * H1, 2 * H2), jnp.float32)
    w2_blk = w2_blk.at[:H1, :H2].set(w2p).at[H1:, H2:].set(w2o)
    b2_blk = jnp.concatenate([b2p, b2o]).reshape(1, 2 * H2)

    bf16 = jnp.bfloat16
    return dict(
        w1=w1_blk.astype(bf16),                     # fused block-diagonal (v6e/v7x)
        w1p=w1p.astype(bf16), w1o=w1o.astype(bf16),  # split per-team form (v5e)
        b1=b1_blk,
        w2=w2_blk.astype(bf16), b2=b2_blk,
        wf1=wf1.astype(bf16), bf1=bf1.reshape(1, HF),
        wf2=p["f_w2"].T.astype(jnp.float32),         # (1, 64) row for the VPU reduce
        bf2=p["f_b2"].reshape(1, 1),
    )


def init_params(key):
    """Synthetic parameters matching the PyTorch module's shapes.

    Linear weights are stored transposed from PyTorch, i.e. [in_features, out_features].
    BatchNorm (eval) is pre-reduced to a per-feature (scale, shift) affine.
    """
    def lin(k, fan_in, fan_out):
        kw, kb = jax.random.split(k)
        bound = 1.0 / jnp.sqrt(jnp.float32(fan_in))
        w = jax.random.uniform(kw, (fan_in, fan_out), jnp.float32, -bound, bound)
        b = jax.random.uniform(kb, (fan_out,), jnp.float32, -bound, bound)
        return w, b

    def bn(k, n, eps=1e-5):
        kg, kb, km, kv = jax.random.split(k, 4)
        gamma = 1.0 + 0.1 * jax.random.normal(kg, (n,), jnp.float32)
        beta = 0.1 * jax.random.normal(kb, (n,), jnp.float32)
        running_mean = 0.1 * jax.random.normal(km, (n,), jnp.float32)
        running_var = jnp.abs(jax.random.normal(kv, (n,), jnp.float32)) + 0.5
        scale = gamma * jax.lax.rsqrt(running_var + eps)
        shift = beta - running_mean * scale
        return scale, shift

    keys = jax.random.split(key, 11)
    p = {}
    for prefix, ks in zip(("p", "o"), (keys[0:4], keys[4:8])):
        w1, b1 = lin(ks[0], IN_TEAM, H1)
        s1, t1 = bn(ks[1], H1)
        w2, b2 = lin(ks[2], H1, H2)
        s2, t2 = bn(ks[3], H2)
        p.update({f"{prefix}_w1": w1, f"{prefix}_b1": b1, f"{prefix}_s1": s1, f"{prefix}_t1": t1,
                  f"{prefix}_w2": w2, f"{prefix}_b2": b2, f"{prefix}_s2": s2, f"{prefix}_t2": t2})
    fw1, fb1 = lin(keys[8], 2 * H2, HF)
    fs1, ft1 = bn(keys[9], HF)
    fw2, fb2 = lin(keys[10], HF, 1)
    p.update({"f_w1": fw1, "f_b1": fb1, "f_s1": fs1, "f_t1": ft1, "f_w2": fw2, "f_b2": fb2})
    return p


def ref_forward(x, p):
    """Pure-JAX f32 reference (eval-mode semantics of the PyTorch module, unfused)."""
    def team(h, pre):
        h = h @ p[f"{pre}_w1"] + p[f"{pre}_b1"]
        h = jnp.maximum(h * p[f"{pre}_s1"] + p[f"{pre}_t1"], 0.0)
        h = h @ p[f"{pre}_w2"] + p[f"{pre}_b2"]
        h = jnp.maximum(h * p[f"{pre}_s2"] + p[f"{pre}_t2"], 0.0)
        return h

    hp = team(x[:, :IN_TEAM], "p")
    ho = team(x[:, IN_TEAM:2 * IN_TEAM], "o")
    c = jnp.concatenate([hp, ho], axis=1)
    h = c @ p["f_w1"] + p["f_b1"]
    h = jnp.maximum(h * p["f_s1"] + p["f_t1"], 0.0)
    return h @ p["f_w2"] + p["f_b2"]


if __name__ == "__main__":
    # TODO(synk): training-mode BatchNorm (batch statistics) and stochastic Dropout
    # are not implemented; this kernel reproduces eval-mode forward semantics
    # (Dropout = identity, BatchNorm folded with running stats).
    root = jax.random.PRNGKey(0)
    kx1, kx2, kx3, kp = jax.random.split(root, 4)
    params = init_params(kp)
    folded = fold_params(params)

    # 1) Multi-tile grid with a ragged tail handled WITHOUT host padding:
    #    B=20, block_b=8 -> grid=3, last tile has 4 valid rows (OOB writes dropped).
    #    Both layer-1 forms (fused block-diagonal and v5e split) are exercised.
    x = jax.random.normal(kx1, (20, IN_ALL), jnp.float32)
    ref = ref_forward(x, params)
    for split in (False, True):
        out = jax.block_until_ready(dual_team_ffn(x, folded, block_b=8, split_l1=split))
        assert out.shape == (20, 1), out.shape
        assert jnp.allclose(out, ref, atol=3e-2, rtol=3e-2), float(jnp.max(jnp.abs(out - ref)))

    # 2) Single ragged tile (B=5 -> one (5,420) block), default TB and auto device choice.
    x_small = jax.random.normal(kx2, (5, IN_ALL), jnp.float32)
    out_small = jax.block_until_ready(dual_team_ffn(x_small, folded))
    ref_small = ref_forward(x_small, params)
    assert out_small.shape == (5, 1), out_small.shape
    assert jnp.allclose(out_small, ref_small, atol=3e-2, rtol=3e-2)

    # 3) bf16 activations straight from the producer (halves x HBM traffic; no wrapper cast).
    x_bf16 = jax.random.normal(kx3, (16, IN_ALL), jnp.float32).astype(jnp.bfloat16)
    out_bf16 = jax.block_until_ready(dual_team_ffn(x_bf16, folded))
    ref_bf16 = ref_forward(x_bf16.astype(jnp.float32), params)
    assert out_bf16.shape == (16, 1), out_bf16.shape
    assert jnp.allclose(out_bf16, ref_bf16, atol=6e-2, rtol=6e-2)

    print("KERNEL_OK")
</pallas_src>

<mosaic_0001>
module attributes {stable_mosaic.version = 11 : i64} {
  func.func @kernel(%arg0: i32, %arg1: memref<8x420xf32, #tpu.memory_space<vmem>>, %arg2: memref<420x256xbf16, #tpu.memory_space<vmem>>, %arg3: memref<1x256xf32, #tpu.memory_space<vmem>>, %arg4: memref<256x128xbf16, #tpu.memory_space<vmem>>, %arg5: memref<1x128xf32, #tpu.memory_space<vmem>>, %arg6: memref<128x64xbf16, #tpu.memory_space<vmem>>, %arg7: memref<1x64xf32, #tpu.memory_space<vmem>>, %arg8: memref<1x64xf32, #tpu.memory_space<vmem>>, %arg9: memref<1x1xf32, #tpu.memory_space<vmem>>, %arg10: memref<8x1xf32, #tpu.memory_space<vmem>>) attributes {dimension_semantics = [#tpu.dimension_semantics<parallel>], iteration_bounds = array<i64: 3>, scalar_prefetch = 0 : i64, scratch_operands = 0 : i64, tpu.core_type = #tpu.core_type<tc>, window_params = [{transform_indices = @transform_0, window_bounds = array<i64: 8, 420>}, {pipeline_mode = #tpu.pipeline_mode<synchronous>, transform_indices = @transform_1, window_bounds = array<i64: 420, 256>}, {pipeline_mode = #tpu.pipeline_mode<synchronous>, transform_indices = @transform_2, window_bounds = array<i64: 1, 256>}, {pipeline_mode = #tpu.pipeline_mode<synchronous>, transform_indices = @transform_3, window_bounds = array<i64: 256, 128>}, {pipeline_mode = #tpu.pipeline_mode<synchronous>, transform_indices = @transform_4, window_bounds = array<i64: 1, 128>}, {pipeline_mode = #tpu.pipeline_mode<synchronous>, transform_indices = @transform_5, window_bounds = array<i64: 128, 64>}, {pipeline_mode = #tpu.pipeline_mode<synchronous>, transform_indices = @transform_6, window_bounds = array<i64: 1, 64>}, {pipeline_mode = #tpu.pipeline_mode<synchronous>, transform_indices = @transform_7, window_bounds = array<i64: 1, 64>}, {pipeline_mode = #tpu.pipeline_mode<synchronous>, transform_indices = @transform_8, window_bounds = array<i64: 1, 1>}, {transform_indices = @transform_9, window_bounds = array<i64: 8, 1>}]} {
    %c0 = arith.constant 0 : index
    %c0_0 = arith.constant 0 : index
    %0 = vector.load %arg1[%c0, %c0_0] : memref<8x420xf32, #tpu.memory_space<vmem>>, vector<8x420xf32>
    %1 = arith.truncf %0 : vector<8x420xf32> to vector<8x420xbf16>
    %c0_1 = arith.constant 0 : index
    %c0_2 = arith.constant 0 : index
    %2 = vector.load %arg2[%c0_1, %c0_2] : memref<420x256xbf16, #tpu.memory_space<vmem>>, vector<420x256xbf16>
    %cst = arith.constant dense<0.000000e+00> : vector<8x256xf32>
    %3 = tpu.matmul %1, %2, %cst {dimension_numbers = #tpu.dot_dimension_numbers<[1], [0], [0], [1], [0, 0, 1, 1], [], []>} : vector<8x420xbf16>, vector<420x256xbf16>, vector<8x256xf32> -> vector<8x256xf32>
    %c0_3 = arith.constant 0 : index
    %c0_4 = arith.constant 0 : index
    %4 = vector.load %arg3[%c0_3, %c0_4] : memref<1x256xf32, #tpu.memory_space<vmem>>, vector<1x256xf32>
    %5 = vector.broadcast %4 : vector<1x256xf32> to vector<8x256xf32>
    %6 = arith.addf %3, %5 : vector<8x256xf32>
    %cst_5 = arith.constant 0.000000e+00 : f32
    %7 = vector.broadcast %cst_5 : f32 to vector<8x256xf32>
    %8 = arith.maximumf %6, %7 : vector<8x256xf32>
    %9 = arith.truncf %8 : vector<8x256xf32> to vector<8x256xbf16>
    %c0_6 = arith.constant 0 : index
    %c0_7 = arith.constant 0 : index
    %10 = vector.load %arg4[%c0_6, %c0_7] : memref<256x128xbf16, #tpu.memory_space<vmem>>, vector<256x128xbf16>
    %cst_8 = arith.constant dense<0.000000e+00> : vector<8x128xf32>
    %11 = tpu.matmul %9, %10, %cst_8 {dimension_numbers = #tpu.dot_dimension_numbers<[1], [0], [0], [1], [0, 0, 1, 1], [], []>} : vector<8x256xbf16>, vector<256x128xbf16>, vector<8x128xf32> -> vector<8x128xf32>
    %c0_9 = arith.constant 0 : index
    %c0_10 = arith.constant 0 : index
    %12 = vector.load %arg5[%c0_9, %c0_10] : memref<1x128xf32, #tpu.memory_space<vmem>>, vector<1x128xf32>
    %13 = vector.broadcast %12 : vector<1x128xf32> to vector<8x128xf32>
    %14 = arith.addf %11, %13 : vector<8x128xf32>
    %cst_11 = arith.constant 0.000000e+00 : f32
    %15 = vector.broadcast %cst_11 : f32 to vector<8x128xf32>
    %16 = arith.maximumf %14, %15 : vector<8x128xf32>
    %17 = arith.truncf %16 : vector<8x128xf32> to vector<8x128xbf16>
    %c0_12 = arith.constant 0 : index
    %c0_13 = arith.constant 0 : index
    %18 = vector.load %arg6[%c0_12, %c0_13] : memref<128x64xbf16, #tpu.memory_space<vmem>>, vector<128x64xbf16>
    %cst_14 = arith.constant dense<0.000000e+00> : vector<8x64xf32>
    %19 = tpu.matmul %17, %18, %cst_14 {dimension_numbers = #tpu.dot_dimension_numbers<[1], [0], [0], [1], [0, 0, 1, 1], [], []>} : vector<8x128xbf16>, vector<128x64xbf16>, vector<8x64xf32> -> vector<8x64xf32>
    %c0_15 = arith.constant 0 : index
    %c0_16 = arith.constant 0 : index
    %20 = vector.load %arg7[%c0_15, %c0_16] : memref<1x64xf32, #tpu.memory_space<vmem>>, vector<1x64xf32>
    %21 = vector.broadcast %20 : vector<1x64xf32> to vector<8x64xf32>
    %22 = arith.addf %19, %21 : vector<8x64xf32>
    %cst_17 = arith.constant 0.000000e+00 : f32
    %23 = vector.broadcast %cst_17 : f32 to vector<8x64xf32>
    %24 = arith.maximumf %22, %23 : vector<8x64xf32>
    %c0_18 = arith.constant 0 : index
    %c0_19 = arith.constant 0 : index
    %25 = vector.load %arg8[%c0_18, %c0_19] : memref<1x64xf32, #tpu.memory_space<vmem>>, vector<1x64xf32>
    %26 = vector.broadcast %25 : vector<1x64xf32> to vector<8x64xf32>
    %27 = arith.mulf %24, %26 : vector<8x64xf32>
    %cst_20 = arith.constant dense<0.000000e+00> : vector<8xf32>
    %28 = vector.multi_reduction <add>, %27, %cst_20 [1] : vector<8x64xf32> to vector<8xf32>
    %29 = vector.shape_cast %28 : vector<8xf32> to vector<8x1xf32>
    %c0_21 = arith.constant 0 : index
    %c0_22 = arith.constant 0 : index
    %30 = vector.load %arg9[%c0_21, %c0_22] : memref<1x1xf32, #tpu.memory_space<vmem>>, vector<1x1xf32>
    %31 = vector.broadcast %30 : vector<1x1xf32> to vector<8x1xf32>
    %32 = arith.addf %29, %31 : vector<8x1xf32>
    %c0_23 = arith.constant 0 : index
    %c0_24 = arith.constant 0 : index
    %33 = vector.load %arg10[%c0_23, %c0_24] : memref<8x1xf32, #tpu.memory_space<vmem>>, vector<8x1xf32>
    tpu.vector_store %arg10[%c0_23, %c0_24], %32 {strides = array<i32>} : memref<8x1xf32, #tpu.memory_space<vmem>>, vector<8x1xf32>,
    return
  }
  func.func @transform_0(%arg0: i32) -> (i32, i32) {
    %c0_i32 = arith.constant 0 : i32
    %c0_i32_0 = arith.constant 0 : i32
    return %arg0, %c0_i32 : i32, i32
  }
  func.func @transform_1(%arg0: i32) -> (i32, i32) {
    %c0_i32 = arith.constant 0 : i32
    %c0_i32_0 = arith.constant 0 : i32
    %c0_i32_1 = arith.constant 0 : i32
    return %c0_i32, %c0_i32_0 : i32, i32
  }
  func.func @transform_2(%arg0: i32) -> (i32, i32) {
    %c0_i32 = arith.constant 0 : i32
    %c0_i32_0 = arith.constant 0 : i32
    %c0_i32_1 = arith.constant 0 : i32
    return %c0_i32, %c0_i32_0 : i32, i32
  }
  func.func @transform_3(%arg0: i32) -> (i32, i32) {
    %c0_i32 = arith.constant 0 : i32
    %c0_i32_0 = arith.constant 0 : i32
    %c0_i32_1 = arith.constant 0 : i32
    return %c0_i32, %c0_i32_0 : i32, i32
  }
  func.func @transform_4(%arg0: i32) -> (i32, i32) {
    %c0_i32 = arith.constant 0 : i32
    %c0_i32_0 = arith.constant 0 : i32
    %c0_i32_1 = arith.constant 0 : i32
    return %c0_i32, %c0_i32_0 : i32, i32
  }
  func.func @transform_5(%arg0: i32) -> (i32, i32) {
    %c0_i32 = arith.constant 0 : i32
    %c0_i32_0 = arith.constant 0 : i32
    %c0_i32_1 = arith.constant 0 : i32
    return %c0_i32, %c0_i32_0 : i32, i32
  }
  func.func @transform_6(%arg0: i32) -> (i32, i32) {
    %c0_i32 = arith.constant 0 : i32
    %c0_i32_0 = arith.constant 0 : i32
    %c0_i32_1 = arith.constant 0 : i32
    return %c0_i32, %c0_i32_0 : i32, i32
  }
  func.func @transform_7(%arg0: i32) -> (i32, i32) {
    %c0_i32 = arith.constant 0 : i32
    %c0_i32_0 = arith.constant 0 : i32
    %c0_i32_1 = arith.constant 0 : i32
    return %c0_i32, %c0_i32_0 : i32, i32
  }
  func.func @transform_8(%arg0: i32) -> (i32, i32) {
    %c0_i32 = arith.constant 0 : i32
    %c0_i32_0 = arith.constant 0 : i32
    %c0_i32_1 = arith.constant 0 : i32
    return %c0_i32, %c0_i32_0 : i32, i32
  }
  func.func @transform_9(%arg0: i32) -> (i32, i32) {
    %c0_i32 = arith.constant 0 : i32
    %c0_i32_0 = arith.constant 0 : i32
    return %arg0, %c0_i32 : i32, i32
  }
}

</mosaic_0001>

<bundles_post_ra>
// kernel: tpu_custom_call.1
= control target key start
LH: loop header
LB: loop body
LE: loop exit
PB: predicated region body
PF: predicated region fallthrough
CT: control target
= control target key end

     0   :  { %s1711_s0 = inlined_call_operand.vmem [shape: f32[20,420], index: 0, kind: input, shape index: {}]   ;;  %s1712_s1 = inlined_call_operand.hbm [shape: bf16[420,256], index: 1, kind: input, shape index: {}]   ;;  %s1713_s2 = inlined_call_operand.vmem [shape: f32[1,256], index: 2, kind: input, shape index: {}]   ;;  %s1714_s3 = inlined_call_operand.hbm [shape: bf16[256,128], index: 3, kind: input, shape index: {}]   ;;  %s1715_s4 = inlined_call_operand.vmem [shape: f32[1,128], index: 4, kind: input, shape index: {}]   ;;  %s1716_s5 = inlined_call_operand.vmem [shape: bf16[128,64], index: 5, kind: input, shape index: {}]   ;;  %s1717_s6 = inlined_call_operand.vmem [shape: f32[1,64], index: 6, kind: input, shape index: {}]   ;;  %s1718_s7 = inlined_call_operand.vmem [shape: f32[1,64], index: 7, kind: input, shape index: {}]   ;;  %s1719_s8 = inlined_call_operand.<no memory space> [shape: f32[1,1], index: 8, kind: input, shape index: {}]   ;;  %s1720_s9 = inlined_call_operand.vmem [shape: f32[20,1], index: 9, kind: output, shape index: {}]  }
   0x1   :  { %v14_v0 = vstv %s1719_s8 }
   0x2   :  { %15 = vst [vmem:[#allocation2] sm:$0x1] %v14_v0 }
   0x3   :  { %16 = vsyncpa [#allocation4], 0 }
   0x4   :  { %17 = vsyncpa [#allocation6], 0  ;;  %s1603_s11 = smov 0  }
   0x5 LB: > { %s1542_s12 = smov [#allocation3]   ;;  %s1609_s14 = sadd.s32 4294967295, %s1540_s11   ;;  %s1540_s11 = sphi %s1603_s11, %s23_s11  }
   0x6   : > { %s260_s13 = sshll.u32 %s1542_s12, 4  ;;  %p1187_p0 = scmp.ge.s32.totalorder %s1540_s11, 1  ;;  %s261_s13 = int_to_ptr.vmem [resolvable:$true] %s260_s13 }
   0x7   : > { %p248_p1 = scmp.lt.s32.totalorder %s1540_s11, 4  ;;  %p1350_p3 = scmp.eq.s32.totalorder %s1609_s14, 0 }
   0x8   : > { %s1543_s15 = smov [#allocation5]   ;;  %s1485_s18 = scalar_lea.vmem %s261_s13, 6784 }
   0x9   : > { %p1613_p2 = pnand %p1187_p0, %p248_p1  ;;  %s276_s16 = sshll.u32 %s1543_s15, 4  ;;  %s277_s16 = int_to_ptr.vmem [resolvable:$true] %s276_s16 }
   0xa   : > { %p1486_p7 = scmp.ne.s32.totalorder %s261_s13, %s1485_s18  ;;  %p1493_p10 = scmp.lt.s32.totalorder %s261_s13, %s261_s13 }
   0xb   : > { %p1343_p4 = pneg %p1613_p2  ;;  %p1494_p11 = scmp.lt.s32.totalorder %s1485_s18, %s1485_s18 }
   0xd   : > { %p1622_p5 = pnand %p1350_p3, %p1343_p4  ;;  %p1495_p12 = por %p1494_p11, %p1493_p10 }
   0xf   : > { %p1476_p6 = pneg %p1622_p5 }
  0x11   : > { %p1488_p8 = pnand %p1486_p7, %p1476_p6 }
  0x13   : > { %p1489_p9 = pneg %p1488_p8 }
  0x15   : > { %p1496_p13 = pnand %p1495_p12, %p1489_p9 }
  0x17   : > { %1499 = shalt.err (!%p1496_p13)
}
  0x18   : > { %s1544_s19 = smov 128   ;;  %s1545_s20 = smov 8  }
  0x19   : > { %1346 = dma.hbm_to_vmem [thread:$0]  (!%p1622_p5), %s1712_s1, 6784, %s261_s13, [#allocation4], %s1544_s19, %s1544_s19, %s1545_s20  }
  0x1a   : > { %s1511_s23 = scalar_lea.vmem %s277_s16, 2048  ;;  %p1519_p7 = scmp.lt.s32.totalorder %s277_s16, %s277_s16 }
  0x1b   : > { %p1512_p0 = scmp.ne.s32.totalorder %s277_s16, %s1511_s23  ;;  %p1520_p8 = scmp.lt.s32.totalorder %s1511_s23, %s1511_s23 }
  0x1d   : > { %p1514_p1 = pnand %p1512_p0, %p1476_p6  ;;  %p1521_p10 = por %p1520_p8, %p1519_p7 }
  0x1f   : > { %p1515_p4 = pneg %p1514_p1 }
  0x21   : > { %p1522_p9 = pnand %p1521_p10, %p1515_p4 }
  0x23   : > { %1525 = shalt.err (!%p1522_p9)
}
  0x24   : > { %s1546_s24 = smov 64   ;;  %s1547_s25 = smov 4  }
  0x25   : > { %1349 = dma.hbm_to_vmem [thread:$0]  (!%p1622_p5), %s1714_s3, 2048, %s277_s16, [#allocation6], %s1546_s24, %s1546_s24, %s1547_s25  }
  0x26   : > { %315 = sbr.rel (%p1613_p2) target bundleno = 859 (0x35b), region = 56 }
  0x2b   : > { %1531 = dma.done.wait (%p1350_p3), [#allocation4], 6784  }
  0x2c   : > { %1533 = vsyncadd (%p1350_p3), [#allocation4], 4294960512 }
  0x2d   : > { %1535 = dma.done.wait (%p1350_p3), [#allocation6], 2048  }
  0x2e   : > { %1537 = vsyncadd (%p1350_p3), [#allocation6], 4294965248  ;;  %v1370_v1 = vld [vmem:[#allocation3 + $0x74] ss:$8 sps:$4 sm:$0xff]   ;;  %v1372_v2 = vld [vmem:[#allocation3 + $0x70] ss:$8 sps:$4 sm:$0xff]  }
  0x2f   : > { %713 = vmatprep.subr.bf16.mxu0 %v1370_v1  ;;  %v1373_v3 = vld [vmem:[#allocation3 + $0x64] ss:$8 sps:$4 sm:$0xff]   ;;  %v1375_v4 = vld [vmem:[#allocation3 + $0x60] ss:$8 sps:$4 sm:$0xff]   ;;  %v1376_v5 = vld [vmem:[#allocation3 + $0x54] ss:$8 sps:$4 sm:$0xff]  }
  0x30   : > { %714 = vmatpush1.bf16.msra.mxu0 %v1372_v2  ;;  %v1378_v6 = vld [vmem:[#allocation3 + $0x50] ss:$8 sps:$4 sm:$0xff]   ;;  %v1384_v7 = vld [vmem:[#allocation3 + $0x174] ss:$8 sps:$4 sm:$0xff]   ;;  %v1379_v9 = vld [vmem:[#allocation3 + $0x44] ss:$8 sps:$4 sm:$0xff]  }
  0x31   : > { %715 = vmatprep.subr.bf16.mxu0 %v1373_v3  ;;  %v1387_v8 = vld [vmem:[#allocation3 + $0x170] ss:$8 sps:$4 sm:$0xff]   ;;  %754 = vmatprep.subr.bf16.mxu1 %v1384_v7  ;;  %v1390_v10 = vld [vmem:[#allocation3 + $0x164] ss:$8 sps:$4 sm:$0xff]   ;;  %v1393_v11 = vld [vmem:[#allocation3 + $0x160] ss:$8 sps:$4 sm:$0xff]  }
  0x32   : > { %755 = vmatpush1.bf16.msra.mxu1 %v1387_v8  ;;  %v1381_v12 = vld [vmem:[#allocation3 + $0x40] ss:$8 sps:$4 sm:$0xff]   ;;  %v1382_v13 = vld [vmem:[#allocation3 + $0x34] ss:$8 sps:$4 sm:$0xff]   ;;  %v1399_v15 = vld [vmem:[#allocation3 + $0x150] ss:$8 sps:$4 sm:$0xff]  }
  0x33   : > { %756 = vmatprep.subr.bf16.mxu1 %v1390_v10  ;;  %v1396_v14 = vld [vmem:[#allocation3 + $0x154] ss:$8 sps:$4 sm:$0xff]   ;;  %v1386_v16 = vld [vmem:[#allocation3 + $0x30] ss:$8 sps:$4 sm:$0xff]   ;;  %v1402_v17 = vld [vmem:[#allocation3 + $0x144] ss:$8 sps:$4 sm:$0xff]  }
  0x34   : > { %716 = vmatpush1.bf16.msra.mxu0 %v1375_v4  ;;  %v1388_v18 = vld [vmem:[#allocation3 + $0x24] ss:$8 sps:$4 sm:$0xff]   ;;  %v1392_v19 = vld [vmem:[#allocation3 + $0x20] ss:$8 sps:$4 sm:$0xff]   ;;  %v1408_v21 = vld [vmem:[#allocation3 + $0x134] ss:$8 sps:$4 sm:$0xff]  }
  0x35   : > { %717 = vmatprep.subr.bf16.mxu0 %v1376_v5  ;;  %v1405_v20 = vld [vmem:[#allocation3 + $0x140] ss:$8 sps:$4 sm:$0xff]   ;;  %p354_p2 = scmp.lt.s32.totalorder %s1609_s14, 2  ;;  %v1394_v22 = vld [vmem:[#allocation3 + $0x14] ss:$8 sps:$4 sm:$0xff]   ;;  %vm702_vm0 = vcmask 293888  }
  0x36   : > { %757 = vmatpush1.bf16.msra.mxu1 %v1393_v11  ;;  %v1411_v23 = vld [vmem:[#allocation3 + $0x130] ss:$8 sps:$4 sm:$0xff]   ;;  %v1414_v25 = vld [vmem:[#allocation3 + $0x124] ss:$8 sps:$4 sm:$0xff]   ;;  %v1417_v27 = vld [vmem:[#allocation3 + $0x120] ss:$8 sps:$4 sm:$0xff]  }
  0x37   : > { %758 = vmatprep.subr.bf16.mxu1 %v1396_v14  ;;  %v1398_v24 = vld [vmem:[#allocation3 + $0x10] ss:$8 sps:$4 sm:$0xff]   ;;  %s1724_s14 = smov (!%p354_p2, %s1609_s14), 2  ;;  %v1400_v26 = vld [vmem:[#allocation3 + $0x4] ss:$8 sps:$4 sm:$0xff]   ;;  %vm706_vm1 = vcmask 1041408  }
  0x38   : > { %718 = vmatpush1.bf16.msra.mxu0 %v1378_v6  ;;  %v1404_v28 = vld [vmem:[#allocation3] ss:$8 sps:$4 sm:$0xff]   ;;  %v1420_v29 = vld [vmem:[#allocation3 + $0x114] ss:$8 sps:$4 sm:$0xff]   ;;  %s1283_s28 = sshll.u32 %s1724_s14, 5  ;;  %vm1549_vm2 = vmmov 0  }
  0x39   : > { %719 = vmatprep.subr.bf16.mxu0 %v1379_v9  ;;  %v1406_v30 = vld [vmem:[#allocation3 + $0xf4] ss:$8 sps:$4 sm:$0xff]   ;;  %v1410_v31 = vld [vmem:[#allocation3 + $0xf0] ss:$8 sps:$4 sm:$0xff]   ;;  %s1662_s10 = scalar_lea.vmem %s1711_s0, %s1283_s28  ;;  %v1426_v33 = vld [vmem:[#allocation3 + $0x104] ss:$8 sps:$4 sm:$0xff]  }
  0x3a   : > { %759 = vmatpush1.bf16.msra.mxu1 %v1399_v15  ;;  %v1423_v32 = vld [vmem:[#allocation3 + $0x110] ss:$8 sps:$4 sm:$0xff]   ;;  %v424_v34 = vld [vmem:[#allocation3 + $0x1a0] sm:$0x33]  ;;  %v365_v42 = vld [vmem:[%s1662_s10 + $0x8] sm:$0xff]  ;;  %vm1096_vm3 = vcmask 523264  }
  0x3b   : > { %760 = vmatprep.subr.bf16.mxu1 %v1402_v17  ;;  %v1412_v35 = vld [vmem:[#allocation3 + $0xe4] ss:$8 sps:$4 sm:$0xff]   ;;  %v367_v36 = vld [vmem:[%s1662_s10 + $0x18] sm:$0xff]  ;;  %v1429_v37 = vld [vmem:[#allocation3 + $0x100] ss:$8 sps:$4 sm:$0xff]   ;;  %v1249_v38 = vcombine.low %v424_v34, %v424_v34  ;;  %v1250_v41 = vcombine.high %v424_v34, %v424_v34  ;;  %v369_v44 = vpack.c.bf16 %v365_v42, %v365_v42  ;;  %s1196_s16 = sshll.u32 %s1724_s14, 3 }
  0x3c   : > { %720 = vmatpush1.bf16.msra.mxu0 %v1381_v12  ;;  %v371_v39 = vpack.c.bf16 %v367_v36, %v367_v36  ;;  %v1416_v40 = vld [vmem:[#allocation3 + $0xe0] ss:$8 sps:$4 sm:$0xff]   ;;  %v1418_v43 = vld [vmem:[#allocation3 + $0xd4] ss:$8 sps:$4 sm:$0xff]   ;;  %v1422_v45 = vld [vmem:[#allocation3 + $0xd0] ss:$8 sps:$4 sm:$0xff]   ;;  %s362_s19 = scalar_lea.vmem %s1720_s9, %s1196_s16 }
  0x3d   : > { %721 = vmatprep.subr.bf16.mxu0 %v1382_v13  ;;  %v708_v46 = vsel %vm706_vm1, %v1249_v38, 0  ;;  %745 = vmatprep.mubr.bf16.mxu0 %v369_v44  ;;  %v1437_v47 = vld [vmem:[#allocation3 + $0x194] ss:$8 sps:$4 sm:$0xff]   ;;  %v1424_v48 = vld [vmem:[#allocation3 + $0xc4] ss:$8 sps:$4 sm:$0xff]   ;;  %vm1108_vm4 = vcmask 7168  }
  0x3e   : > { %761 = vmatpush1.bf16.msra.mxu1 %v1405_v20  ;;  %1252 = vmatprep.mubr.msk.bf16.mxu1 %vm702_vm0, %v371_v39  ;;  %v1428_v49 = vld [vmem:[#allocation3 + $0xc0] ss:$8 sps:$4 sm:$0xff]   ;;  %v1430_v50 = vld [vmem:[#allocation3 + $0xb4] ss:$8 sps:$4 sm:$0xff]   ;;  %v1440_v51 = vld [vmem:[#allocation3 + $0x190] ss:$8 sps:$4 sm:$0xff]  }
  0x3f   : > { %762 = vmatprep.subr.bf16.mxu1 %v1408_v21  ;;  %v1443_v52 = vld [vmem:[#allocation3 + $0x184] ss:$8 sps:$4 sm:$0xff]   ;;  %v1446_v53 = vld [vmem:[#allocation3 + $0x180] ss:$8 sps:$4 sm:$0xff]   ;;  %v1433_v55 = vld [vmem:[#allocation3 + $0xb0] ss:$8 sps:$4 sm:$0xff]  }
  0x40   : > { %722 = vmatpush1.bf16.msra.mxu0 %v1386_v16  ;;  %v366_v54 = vld [vmem:[%s1662_s10 + $0x10] sm:$0xff]  ;;  %v1450_v56 = vld [vmem:[#allocation5 + $0x78] sm:$0xff]   ;;  %v1452_v61 = vld [vmem:[#allocation5 + $0x70] sm:$0xff]  }
  0x41   : > { %723 = vmatprep.subr.bf16.mxu0 %v1388_v18  ;;  %v1435_v57 = vld [vmem:[#allocation3 + $0xa4] ss:$8 sps:$4 sm:$0xff]   ;;  %v1439_v59 = vld [vmem:[#allocation3 + $0xa0] ss:$8 sps:$4 sm:$0xff]   ;;  %v370_v60 = vpack.c.bf16 %v366_v54, %v366_v54  ;;  %v1441_v62 = vld [vmem:[#allocation3 + $0x94] ss:$8 sps:$4 sm:$0xff]  }
  0x42   : > { %763 = vmatpush1.bf16.msra.mxu1 %v1411_v23  ;;  %v1451_v58 = vld [vmem:[#allocation5 + $0x38] sm:$0xff]   ;;  %v1453_v63 = vld [vmem:[#allocation5 + $0x30] sm:$0xff]   ;;  %v1454_v1 = vld [vmem:[#allocation5 + $0x68] sm:$0xff]   ;;  %v1548_v18 = vmov 0.0   ;;  %v427_v23 = vlaneseq }
  0x43   : > { %764 = vmatprep.subr.bf16.mxu1 %v1414_v25  ;;  %v1445_v0 = vld [vmem:[#allocation3 + $0x90] ss:$8 sps:$4 sm:$0xff]   ;;  %v1447_v2 = vld [vmem:[#allocation3 + $0x84] ss:$8 sps:$4 sm:$0xff]   ;;  %v1449_v4 = vld [vmem:[#allocation3 + $0x80] ss:$8 sps:$4 sm:$0xff]  }
  0x44   : > { %724 = vmatpush1.bf16.msra.mxu0 %v1392_v19  ;;  %v1455_v3 = vld [vmem:[#allocation5 + $0x28] sm:$0xff]   ;;  %v364_v5 = vld [vmem:[%s1662_s10] sm:$0xff]  ;;  %v1456_v6 = vld [vmem:[#allocation5 + $0x60] sm:$0xff]  }
  0x45   : > { %725 = vmatprep.subr.bf16.mxu0 %v1394_v22  ;;  %v368_v7 = vpack.c.bf16 %v364_v5, %v364_v5  ;;  %v1457_v8 = vld [vmem:[#allocation5 + $0x20] sm:$0xff]   ;;  %v1458_v9 = vld [vmem:[#allocation5 + $0x58] sm:$0xff]   ;;  %v1460_v11 = vld [vmem:[#allocation5 + $0x50] sm:$0xff]  }
  0x46   : > { %765 = vmatpush1.bf16.msra.mxu1 %v1417_v27  ;;  %v1459_v10 = vld [vmem:[#allocation5 + $0x18] sm:$0xff]   ;;  %v1461_v12 = vld [vmem:[#allocation5 + $0x10] sm:$0xff]   ;;  %v1462_v13 = vld [vmem:[#allocation5 + $0x48] sm:$0xff]  }
  0x47   : > { %766 = vmatprep.subr.bf16.mxu1 %v1420_v29  ;;  %v1463_v14 = vld [vmem:[#allocation5 + $0x8] sm:$0xff]   ;;  %v1464_v15 = vld [vmem:[#allocation5 + $0x40] sm:$0xff]   ;;  %v1469_v21 = vld [vmem:[%s1716_s5 + $0x20] sm:$0xff]  }
  0x48   : > { %726 = vmatpush1.bf16.msra.mxu0 %v1398_v24  ;;  %v1465_v16 = vld [vmem:[#allocation5] sm:$0xff]   ;;  %v1466_v17 = vld [vmem:[%s1716_s5 + $0x38] sm:$0xff]  }
  0x49   : > { %727 = vmatprep.subr.bf16.mxu0 %v1400_v26  ;;  %v1467_v19 = vld [vmem:[%s1716_s5 + $0x30] sm:$0xff]   ;;  %v1468_v20 = vld [vmem:[%s1716_s5 + $0x28] sm:$0xff]   ;;  %v1470_v22 = vld [vmem:[%s1716_s5 + $0x18] sm:$0xff]   ;;  %v428_v26 = vshrl.u32 %v427_v23, 7 }
  0x4a   : > { %767 = vmatpush1.bf16.msra.mxu1 %v1423_v32 }
  0x4b   : > { %768 = vmatprep.subr.bf16.mxu1 %v1426_v33 }
  0x4c   : > { %728 = vmatpush1.bf16.msra.mxu0 %v1404_v28  ;;  %v429_v28 = vsub.s32 0, %v428_v26 }
  0x4d   : > { %729 = vmatprep.subr.bf16.mxu0 %v1406_v30  ;;  %v425_v30 = vld [vmem:[%s1713_s2] sm:$0x3] }
  0x4e   : > { %769 = vmatpush1.bf16.msra.mxu1 %v1429_v37  ;;  %v430_v32 = vrot.slane %v425_v30, %v429_v28 }
  0x4f   : > { %1251 = vmatprep.subr.msk.bf16.mxu1 %vm706_vm1, %v1250_v41 }
  0x50   : > { %730 = vmatpush2.bf16.msra.mxu0 %v1410_v31  ;;  %v433_v31 = vsub.s32 1, %v428_v26 }
  0x51   : > { %731 = vmatprep.subr.bf16.mxu0 %v1412_v35 }
  0x52   : > { %781 = vmatpush2.bf16.msra.mxu1 %v708_v46  ;;  %v434_v33 = vrot.slane %v425_v30, %v433_v31  ;;  %v1471_v46 = vld [vmem:[%s1716_s5 + $0x10] sm:$0xff]  }
  0x53   : > { %782 = vmatprep.subr.bf16.mxu1 %v1437_v47  ;;  %v1472_v47 = vld [vmem:[%s1716_s5 + $0x8] sm:$0xff]  }
  0x54   : > { %732 = vmatpush2.bf16.msra.mxu0 %v1416_v40 }
  0x55   : > { %733 = vmatprep.subr.bf16.mxu0 %v1418_v43 }
  0x56   : > { %783 = vmatpush2.bf16.msra.mxu1 %v1440_v51 }
  0x57   : > { %784 = vmatprep.subr.bf16.mxu1 %v1443_v52 }
  0x58   : > { %734 = vmatpush2.bf16.msra.mxu0 %v1422_v45 }
  0x59   : > { %735 = vmatprep.subr.bf16.mxu0 %v1424_v48  ;;  %v1473_v48 = vld [vmem:[%s1716_s5] sm:$0xff]  }
  0x5a   : > { %785 = vmatpush2.bf16.msra.mxu1 %v1446_v53 }
  0x5b   : > { %1284 = vmatprep.subr.bf16.mxu1 %v1450_v56 }
  0x5c   : > { %736 = vmatpush2.bf16.msra.mxu0 %v1428_v49 }
  0x5d   : > { %737 = vmatprep.subr.bf16.mxu0 %v1430_v50  ;;  %787 = vmatmul.mubr.bf16.vlgmr.msra.gmra.mxu1 %v370_v60  ;;  %v1253_v50 = vld [vmem:[%s1715_s4] ss:$0 sm:$0xff] }
  0x5e   : > { %1285 = vmatpush3.bf16.msra.mxu1 %v1451_v58  ;;  %v1270_v58 = vld [vmem:[%s1717_s6] ss:$0 sm:$0xff] }
  0x5f   : > { %1286 = vmatprep.subr.bf16.mxu1 %v1452_v61 }
  0x60   : > { %738 = vmatpush2.bf16.msra.mxu0 %v1433_v55 }
  0x61   : > { %739 = vmatprep.subr.bf16.mxu0 %v1435_v57 }
  0x62   : > { %1287 = vmatpush3.bf16.msra.mxu1 %v1453_v63 }
  0x63   : > { %1288 = vmatprep.subr.bf16.mxu1 %v1454_v1 }
  0x64   : > { %740 = vmatpush2.bf16.msra.mxu0 %v1439_v59 }
  0x65   : > { %741 = vmatprep.subr.bf16.mxu0 %v1441_v62  ;;  %v1279_v62 = vld [vmem:[%s1718_s7] ss:$0 sm:$0xff] }
  0x66   : > { %1289 = vmatpush3.bf16.msra.mxu1 %v1455_v3 }
  0x67   : > { %1290 = vmatprep.subr.bf16.mxu1 %v1456_v6 }
  0x68   : > { %742 = vmatpush2.bf16.msra.mxu0 %v1445_v0 }
  0x69   : > { %743 = vmatprep.subr.bf16.mxu0 %v1447_v2 }
  0x6a   : > { %1291 = vmatpush3.bf16.msra.mxu1 %v1457_v8 }
  0x6b   : > { %1292 = vmatprep.subr.bf16.mxu1 %v1458_v9 }
  0x6c   : > { %744 = vmatpush2.bf16.msra.mxu0 %v1449_v4  ;;  %v1280_v4 = vld [vmem:[#allocation2] ss:$0 sm:$0xff] }
  0x6d   : > { %1315 = vmatprep.subr.bf16.mxu0 %v1548_v18 }
  0x6e   : > { %1293 = vmatpush3.bf16.msra.mxu1 %v1459_v10 }
  0x6f   : > { %746 = vmatmul.mubr.bf16.vlgmr.msra.gmra.mxu0 %v368_v7  ;;  %1294 = vmatprep.subr.bf16.mxu1 %v1460_v11 }
  0x70   : > { %1316 = vmatpush3.bf16.msra.mxu0 %v1466_v17  ;;  %1331 = vmatprep.mubr.msk.bf16.mxu0 %vm1549_vm2, %v1548_v18 }
  0x71   : > { %1317 = vmatprep.subr.bf16.mxu0 %v1548_v18 }
  0x72   : > { %1295 = vmatpush3.bf16.msra.mxu1 %v1461_v12 }
  0x73   : > { %1296 = vmatprep.subr.bf16.mxu1 %v1462_v13 }
  0x74   : > { %1318 = vmatpush3.bf16.msra.mxu0 %v1467_v19 }
  0x75   : > { %1319 = vmatprep.subr.bf16.mxu0 %v1548_v18 }
  0x76   : > { %1297 = vmatpush3.bf16.msra.mxu1 %v1463_v14 }
  0x77   : > { %1298 = vmatprep.subr.bf16.mxu1 %v1464_v15 }
  0x78   : > { %1320 = vmatpush3.bf16.msra.mxu0 %v1468_v20 }
  0x79   : > { %1321 = vmatprep.subr.bf16.mxu0 %v1548_v18 }
  0x7a   : > { %1299 = vmatpush3.bf16.msra.mxu1 %v1465_v16 }
  0x7c   : > { %1322 = vmatpush3.bf16.msra.mxu0 %v1469_v21 }
  0x7d   : > { %1323 = vmatprep.subr.bf16.mxu0 %v1548_v18 }
  0x80   : > { %1324 = vmatpush3.bf16.msra.mxu0 %v1470_v22 }
  0x81   : > { %1325 = vmatprep.subr.bf16.mxu0 %v1548_v18 }
  0x84   : > { %1326 = vmatpush3.bf16.msra.mxu0 %v1471_v46 }
  0x85   : > { %1327 = vmatprep.subr.bf16.mxu0 %v1548_v18 }
  0x88   : > { %1328 = vmatpush3.bf16.msra.mxu0 %v1472_v47 }
  0x89   : > { %1329 = vmatprep.subr.bf16.mxu0 %v1548_v18 }
  0x8c   : > { %1330 = vmatpush3.bf16.msra.mxu0 %v1473_v48 }
 0x11d   : > { %v788_v24 = vpop.f32.mrf.mxu1 }
 0x11f   : > { %v790_v25 = vpop.f32.mrf.mxu1 }
 0x121   : > { %v792_v27 = vpop.f32.mrf.mxu1 }
 0x123   : > { %v793_v29 = vpop.f32.mrf.mxu1 }
 0x12f   : > { %v747_v34 = vpop.f32.mrf.mxu0 }
 0x130   : > { %v748_v35 = vadd.f32 %v747_v34, %v430_v32 }
 0x131   : > { %v749_v36 = vpop.f32.mrf.mxu0 }
 0x132   : > { %v789_v37 = vadd.f32 %v788_v24, %v748_v35  ;;  %v750_v38 = vadd.f32 %v749_v36, %v434_v33 }
 0x133   : > { %v751_v39 = vpop.f32.mrf.mxu0 }
 0x134   : > { %v791_v40 = vadd.f32 %v790_v25, %v750_v38  ;;  %v795_v41 = vmax.f32 %v789_v37, 0.0 }
 0x135   : > { %v752_v42 = vpop.f32.mrf.mxu0 }
 0x136   : > { %v796_v43 = vmax.f32 %v791_v40, 0.0  ;;  %v797_v45 = vpack.c.bf16 %v795_v41, %v795_v41 }
 0x138   : > { %v798_v44 = vpack.c.bf16 %v796_v43, %v796_v43 }
 0x13a   : > { %966 = vmatprep.mubr.bf16.mxu1 %v798_v44 }
 0x13b   : > { %967 = vmatmul.mubr.bf16.vlgmr.msra.gmra.mxu1 %v797_v45 }
 0x1fb   : > { %v1300_v49 = vpop.f32.mrf.mxu1 }
 0x1fd   : > { %v1301_v51 = vpop.f32.mrf.mxu1 }
 0x1fe   : > { %v1302_v52 = vadd.f32 %v1301_v51, %v1300_v49 }
 0x1ff   : > { %v1303_v53 = vpop.f32.mrf.mxu1 }
 0x200   : > { %v969_v54 = vadd.f32 %v1302_v52, %v1253_v50 }
 0x201   : > { %v1304_v55 = vpop.f32.mrf.mxu1 }
 0x202   : > { %v974_v56 = vmax.f32 %v969_v54, 0.0 }
 0x204   : > { %v975_v57 = vpack.c.bf16 %v974_v56, %v974_v56 }
 0x206   : > { %1332 = vmatmul.mubr.bf16.vlgmr.msra.gmra.mxu0 %v975_v57 }
 0x2c6   : > { %v1081_v59 = vpop.f32.mrf.mxu0 }
 0x2c7   : > { %v1082_v60 = vadd.f32 %v1270_v58, %v1081_v59 }
 0x2c8   : > { %v1333_v61 = vpop.f32.mrf.mxu0 }
 0x2c9   : > { %v1087_v63 = vmax.f32 %v1082_v60, 0.0 }
 0x2ca   : > { %v1084_v0 = vpop.f32.mrf.mxu0 }
 0x2cb   : > { %v1095_v1 = vmul.f32 %v1279_v62, %v1087_v63 }
 0x2cc   : > { %v1334_v2 = vpop.f32.mrf.mxu0 }
 0x2cd   : > { %v1097_v3 = vsel %vm1096_vm3, %v1095_v1, 0.0 }
 0x2ce   : > { %1098 = vadd.xlane.f32.xlu0 %v1097_v3 }
 0x357   : > { %v1099_v5 = vpop.xlane.xlu0 %1098 }
 0x358   : > { %v1107_v6 = vadd.f32 %v1280_v4, %v1099_v5 }
 0x35a   : > { %1109 = vst.msk [vmem:[%s362_s19] sm:$0xff] %vm1108_vm4, %v1107_v6 }
 0x35b PF: > { %s23_s11 = sadd.s32 1, %s1540_s11  }
 0x35c   : > { %p20_p3 = scmp.ge.s32.totalorder %s23_s11, 5  }
 0x35e   :  { %22 = sbr.rel (!%p20_p3) target bundleno = 5 (0x5), region = 95 }
 0x363   :  { %1129 = vsyncpa [#allocation4], 1 }
 0x364   :  { %1131 = vsyncpa [#allocation4 + $0x1], 1 }
 0x365   :  { %1132 = vsyncpa [#allocation6], 1 }

</bundles_post_ra>
